<compile_context>
chip_gen: v6e
topology: v6e:2x2x1
jax: 0.10.0
libtpu: 0.0.40
codegen_flags: <defaults>
</compile_context>

<pallas_src>
import functools

import jax
import jax.numpy as jnp
from jax.experimental import pallas as pl
from jax.experimental.pallas import tpu as pltpu


def _postprocess_kernel(use_matching, subject_category_id, *refs):
    """Fused HOI post-processing for one (TB, Q, *) batch tile."""
    if use_matching:
        (obj_logits_ref, verb_logits_ref, match_logits_ref,
         sub_boxes_ref, obj_boxes_ref, scale_ref,
         score_ref, verb_ref, label_ref, box_ref) = refs
    else:
        (obj_logits_ref, verb_logits_ref,
         sub_boxes_ref, obj_boxes_ref, scale_ref,
         score_ref, verb_ref, label_ref, box_ref) = refs

    # ---- object-class softmax max / argmax (fused, no full prob tensor) ----
    logits = obj_logits_ref[...].astype(jnp.float32)               # (TB, Q, C)
    tb, q, c = logits.shape
    fg = logits[:, :, : c - 1]                                      # foreground
    no_obj = logits[:, :, c - 1:c]                                  # "no object"
    max_fg = jnp.max(fg, axis=-1, keepdims=True)                    # (TB, Q, 1)
    m = jnp.maximum(max_fg, no_obj)                                 # max over all C
    denom = jnp.sum(jnp.exp(logits - m), axis=-1, keepdims=True)
    obj_scores = jnp.exp(max_fg - m) / denom                        # (TB, Q, 1)
    score_ref[...] = obj_scores

    # first-occurrence argmax over foreground classes (exp is monotone)
    col = jax.lax.broadcasted_iota(jnp.int32, fg.shape, 2)
    obj_labels = jnp.min(jnp.where(fg == max_fg, col, jnp.int32(c)),
                         axis=-1, keepdims=True)                    # (TB, Q, 1)
    label_ref[:, :q, :] = jnp.full((tb, q, 1), subject_category_id, jnp.int32)
    label_ref[:, q:, :] = obj_labels

    # ---- verb scores ----
    vs = jax.nn.sigmoid(verb_logits_ref[...].astype(jnp.float32)) * obj_scores
    if use_matching:
        ml = match_logits_ref[...].astype(jnp.float32)              # (TB, Q, 2)
        # softmax(ml)[..., 1] == sigmoid(ml[...,1] - ml[...,0])
        vs = vs * jax.nn.sigmoid(ml[:, :, 1:2] - ml[:, :, 0:1])
    verb_ref[...] = vs

    # ---- boxes: cxcywh -> xyxy, pixel-scaled; written in final (2Q, 4) layout
    s = scale_ref[...].astype(jnp.float32)                          # (TB, 1, 2)=(w,h)

    sb = sub_boxes_ref[...].astype(jnp.float32)                     # (TB, Q, 4)
    ctr, half = sb[:, :, 0:2], sb[:, :, 2:4] * 0.5
    box_ref[:, :q, 0:2] = (ctr - half) * s
    box_ref[:, :q, 2:4] = (ctr + half) * s

    ob = obj_boxes_ref[...].astype(jnp.float32)                     # (TB, Q, 4)
    ctr, half = ob[:, :, 0:2], ob[:, :, 2:4] * 0.5
    box_ref[:, q:, 0:2] = (ctr - half) * s
    box_ref[:, q:, 2:4] = (ctr + half) * s


def postprocess_hoi_pallas(outputs, target_sizes, *,
                           subject_category_id=0, use_matching=True):
    obj_logits = outputs['pred_obj_logits']
    verb_logits = outputs['pred_verb_logits']
    sub_boxes = outputs['pred_sub_boxes']
    obj_boxes = outputs['pred_obj_boxes']
    B, Q, C = obj_logits.shape
    V = verb_logits.shape[-1]
    assert target_sizes.shape == (B, 2)

    img_h = target_sizes[:, 0].astype(jnp.float32)
    img_w = target_sizes[:, 1].astype(jnp.float32)
    scale_wh = jnp.stack([img_w, img_h], axis=1).reshape(B, 1, 2)   # (w, h)

    # Batch tiling: whole batch (or halves) per grid step.  Two steps when B is
    # even so the 'parallel' axis can shard across v7x's two TensorCores; halve
    # further only if a step would blow a conservative scoped-VMEM budget
    # (keeps the double-buffered footprint well under v5e's 16 MiB default).
    TB = B // 2 if (B >= 2 and B % 2 == 0) else B
    itemsize = jnp.dtype(obj_logits.dtype).itemsize
    in_bytes = Q * (C + V + (2 if use_matching else 0) + 8) * itemsize + 8
    out_bytes = Q * (1 + V) * 4 + 2 * Q * 4 + 2 * Q * 4 * 4
    bytes_per_img = in_bytes + out_bytes
    while TB > 1 and TB % 2 == 0 and TB * bytes_per_img > (4 << 20):
        TB //= 2
    grid = (B // TB,)  # TB always divides B by construction

    def spec(rows, d):
        return pl.BlockSpec((TB, rows, d), lambda b: (b, 0, 0))

    in_specs = [spec(Q, C), spec(Q, V)]
    args = [obj_logits, verb_logits]
    if use_matching:
        match_logits = outputs['pred_matching_logits']
        in_specs.append(spec(Q, match_logits.shape[-1]))
        args.append(match_logits)
    in_specs += [spec(Q, 4), spec(Q, 4), spec(1, 2)]
    args += [sub_boxes, obj_boxes, scale_wh]

    out_shape = (
        jax.ShapeDtypeStruct((B, Q, 1), jnp.float32),       # obj_scores
        jax.ShapeDtypeStruct((B, Q, V), jnp.float32),        # verb_scores
        jax.ShapeDtypeStruct((B, 2 * Q, 1), jnp.int32),      # labels
        jax.ShapeDtypeStruct((B, 2 * Q, 4), jnp.float32),    # boxes
    )
    out_specs = [spec(Q, 1), spec(Q, V), spec(2 * Q, 1), spec(2 * Q, 4)]

    score_out, verb_out, label_out, box_out = pl.pallas_call(
        functools.partial(_postprocess_kernel, use_matching, subject_category_id),
        grid=grid,
        in_specs=in_specs,
        out_specs=out_specs,
        out_shape=out_shape,
        compiler_params=pltpu.CompilerParams(dimension_semantics=("parallel",)),
    )(*args)

    obj_scores = score_out[:, :, 0]           # (B, Q)
    verb_scores = verb_out                    # (B, Q, V)
    labels = label_out[:, :, 0]               # (B, 2Q)
    boxes = box_out                           # (B, 2Q, 4)
    ids = jnp.arange(2 * Q)

    # Per-image dict assembly to match the module's list-of-dicts API.
    results = []
    for i in range(B):
        results.append({
            'labels': labels[i],
            'boxes': boxes[i],
            'obj_scores': obj_scores[i],
            'verb_scores': verb_scores[i],
            'sub_ids': ids[:Q],
            'obj_ids': ids[Q:],
        })
    return results


def _reference(outputs, target_sizes, use_matching=True):
    """Pure-JAX reference mirroring the PyTorch module (f32)."""
    obj_logits = outputs['pred_obj_logits'].astype(jnp.float32)
    prob = jax.nn.softmax(obj_logits, -1)
    obj_scores = prob[..., :-1].max(-1)
    obj_labels = prob[..., :-1].argmax(-1)
    verb_scores = jax.nn.sigmoid(outputs['pred_verb_logits'].astype(jnp.float32))
    vs = verb_scores * obj_scores[..., None]
    if use_matching:
        ms = jax.nn.softmax(
            outputs['pred_matching_logits'].astype(jnp.float32), -1)[..., 1]
        vs = vs * ms[..., None]
    h = target_sizes[:, 0].astype(jnp.float32)
    w = target_sizes[:, 1].astype(jnp.float32)
    scale = jnp.stack([w, h, w, h], axis=1)[:, None, :]

    def xyxy(b):
        b = b.astype(jnp.float32)
        ctr, half = b[..., 0:2], b[..., 2:4] * 0.5
        return jnp.concatenate([ctr - half, ctr + half], axis=-1) * scale

    return (obj_scores, obj_labels, vs,
            xyxy(outputs['pred_sub_boxes']), xyxy(outputs['pred_obj_boxes']))


if __name__ == "__main__":
    B, Q, C, V = 2, 8, 12, 16  # C = 11 obj classes + 1 "no object"; V verb classes
    key = jax.random.PRNGKey(0)
    k1, k2, k3, k4, k5 = jax.random.split(key, 5)
    outputs = {
        'pred_obj_logits': jax.random.normal(k1, (B, Q, C), jnp.float32),
        'pred_verb_logits': jax.random.normal(k2, (B, Q, V), jnp.float32),
        'pred_matching_logits': jax.random.normal(k3, (B, Q, 2), jnp.float32),
        'pred_sub_boxes': jax.random.uniform(k4, (B, Q, 4), jnp.float32, 0.1, 0.9),
        'pred_obj_boxes': jax.random.uniform(k5, (B, Q, 4), jnp.float32, 0.1, 0.9),
    }
    target_sizes = jnp.array([[480.0, 640.0], [320.0, 512.0]], jnp.float32)  # (h, w)

    # use_matching=True path
    results = postprocess_hoi_pallas(outputs, target_sizes,
                                     subject_category_id=0, use_matching=True)
    jax.block_until_ready(results)

    ref_os, ref_ol, ref_vs, ref_sb, ref_ob = _reference(outputs, target_sizes, True)
    for i in range(B):
        assert jnp.allclose(results[i]['obj_scores'], ref_os[i], atol=1e-5, rtol=1e-5)
        assert jnp.array_equal(results[i]['labels'][Q:], ref_ol[i])
        assert jnp.all(results[i]['labels'][:Q] == 0)
        assert jnp.allclose(results[i]['verb_scores'], ref_vs[i], atol=1e-5, rtol=1e-5)
        assert jnp.allclose(results[i]['boxes'][:Q], ref_sb[i], atol=1e-4, rtol=1e-5)
        assert jnp.allclose(results[i]['boxes'][Q:], ref_ob[i], atol=1e-4, rtol=1e-5)

    # use_matching=False path (no placeholder matching tensor is allocated)
    results_nm = postprocess_hoi_pallas(outputs, target_sizes,
                                        subject_category_id=0, use_matching=False)
    jax.block_until_ready(results_nm)
    _, _, ref_vs_nm, _, _ = _reference(outputs, target_sizes, False)
    for i in range(B):
        assert jnp.allclose(results_nm[i]['verb_scores'], ref_vs_nm[i],
                            atol=1e-5, rtol=1e-5)

    print("KERNEL_OK")
</pallas_src>

<mosaic_0001>
module attributes {stable_mosaic.version = 11 : i64} {
  func.func @_postprocess_kernel(%arg0: i32, %arg1: memref<1x8x12xf32, #tpu.memory_space<vmem>>, %arg2: memref<1x8x16xf32, #tpu.memory_space<vmem>>, %arg3: memref<1x8x2xf32, #tpu.memory_space<vmem>>, %arg4: memref<1x8x4xf32, #tpu.memory_space<vmem>>, %arg5: memref<1x8x4xf32, #tpu.memory_space<vmem>>, %arg6: memref<1x1x2xf32, #tpu.memory_space<vmem>>, %arg7: memref<1x8x1xf32, #tpu.memory_space<vmem>>, %arg8: memref<1x8x16xf32, #tpu.memory_space<vmem>>, %arg9: memref<1x16x1xi32, #tpu.memory_space<vmem>>, %arg10: memref<1x16x4xf32, #tpu.memory_space<vmem>>) attributes {dimension_semantics = [#tpu.dimension_semantics<parallel>], iteration_bounds = array<i64: 2>, scalar_prefetch = 0 : i64, scratch_operands = 0 : i64, tpu.core_type = #tpu.core_type<tc>, window_params = [{transform_indices = @transform_0, window_bounds = array<i64: 1, 8, 12>}, {transform_indices = @transform_1, window_bounds = array<i64: 1, 8, 16>}, {transform_indices = @transform_2, window_bounds = array<i64: 1, 8, 2>}, {transform_indices = @transform_3, window_bounds = array<i64: 1, 8, 4>}, {transform_indices = @transform_4, window_bounds = array<i64: 1, 8, 4>}, {transform_indices = @transform_5, window_bounds = array<i64: 1, 1, 2>}, {transform_indices = @transform_6, window_bounds = array<i64: 1, 8, 1>}, {transform_indices = @transform_7, window_bounds = array<i64: 1, 8, 16>}, {transform_indices = @transform_8, window_bounds = array<i64: 1, 16, 1>}, {transform_indices = @transform_9, window_bounds = array<i64: 1, 16, 4>}]} {
    %c0 = arith.constant 0 : index
    %c0_0 = arith.constant 0 : index
    %c0_1 = arith.constant 0 : index
    %0 = vector.load %arg1[%c0, %c0_0, %c0_1] : memref<1x8x12xf32, #tpu.memory_space<vmem>>, vector<1x8x12xf32>
    %1 = vector.extract_strided_slice %0 {offsets = [0, 0, 0], sizes = [1, 8, 11], strides = [1, 1, 1]} : vector<1x8x12xf32> to vector<1x8x11xf32>
    %2 = vector.extract_strided_slice %0 {offsets = [0, 0, 11], sizes = [1, 8, 1], strides = [1, 1, 1]} : vector<1x8x12xf32> to vector<1x8x1xf32>
    %cst = arith.constant dense<0xFF800000> : vector<1x8xf32>
    %3 = vector.multi_reduction <maximumf>, %1, %cst [2] : vector<1x8x11xf32> to vector<1x8xf32>
    %4 = vector.shape_cast %3 : vector<1x8xf32> to vector<1x8x1xf32>
    %5 = arith.maximumf %4, %2 : vector<1x8x1xf32>
    %6 = vector.broadcast %5 : vector<1x8x1xf32> to vector<1x8x12xf32>
    %7 = arith.subf %0, %6 : vector<1x8x12xf32>
    %8 = math.exp %7 : vector<1x8x12xf32>
    %cst_2 = arith.constant dense<0.000000e+00> : vector<1x8xf32>
    %9 = vector.multi_reduction <add>, %8, %cst_2 [2] : vector<1x8x12xf32> to vector<1x8xf32>
    %10 = vector.shape_cast %9 : vector<1x8xf32> to vector<1x8x1xf32>
    %11 = arith.subf %4, %5 : vector<1x8x1xf32>
    %12 = math.exp %11 : vector<1x8x1xf32>
    %13 = arith.divf %12, %10 : vector<1x8x1xf32>
    %c0_3 = arith.constant 0 : index
    %c0_4 = arith.constant 0 : index
    %c0_5 = arith.constant 0 : index
    %14 = vector.load %arg7[%c0_3, %c0_4, %c0_5] : memref<1x8x1xf32, #tpu.memory_space<vmem>>, vector<1x8x1xf32>
    tpu.vector_store %arg7[%c0_3, %c0_4, %c0_5], %13 {strides = array<i32>} : memref<1x8x1xf32, #tpu.memory_space<vmem>>, vector<1x8x1xf32>,
    %15 = tpu.iota {dimensions = array<i32: 2>} : vector<1x8x11xi32>
    %16 = vector.broadcast %4 : vector<1x8x1xf32> to vector<1x8x11xf32>
    %17 = arith.cmpf oeq, %1, %16 : vector<1x8x11xf32>
    %c12_i32 = arith.constant 12 : i32
    %18 = vector.broadcast %c12_i32 : i32 to vector<1x8x11xi32>
    %19 = arith.select %17, %15, %18 : vector<1x8x11xi1>, vector<1x8x11xi32>
    %cst_6 = arith.constant dense<2147483647> : vector<1x8xi32>
    %20 = vector.multi_reduction <minsi>, %19, %cst_6 [2] : vector<1x8x11xi32> to vector<1x8xi32>
    %21 = vector.shape_cast %20 : vector<1x8xi32> to vector<1x8x1xi32>
    %c0_i32 = arith.constant 0 : i32
    %22 = vector.broadcast %c0_i32 : i32 to vector<1x8x1xi32>
    %c0_7 = arith.constant 0 : index
    %c0_8 = arith.constant 0 : index
    %c0_9 = arith.constant 0 : index
    %23 = vector.load %arg9[%c0_7, %c0_8, %c0_9] : memref<1x16x1xi32, #tpu.memory_space<vmem>>, vector<1x8x1xi32>
    tpu.vector_store %arg9[%c0_7, %c0_8, %c0_9], %22 {strides = array<i32>} : memref<1x16x1xi32, #tpu.memory_space<vmem>>, vector<1x8x1xi32>,
    %c0_10 = arith.constant 0 : index
    %c8 = arith.constant 8 : index
    %c0_11 = arith.constant 0 : index
    %24 = vector.load %arg9[%c0_10, %c8, %c0_11] : memref<1x16x1xi32, #tpu.memory_space<vmem>>, vector<1x8x1xi32>
    tpu.vector_store %arg9[%c0_10, %c8, %c0_11], %21 {strides = array<i32>} : memref<1x16x1xi32, #tpu.memory_space<vmem>>, vector<1x8x1xi32>,
    %c0_12 = arith.constant 0 : index
    %c0_13 = arith.constant 0 : index
    %c0_14 = arith.constant 0 : index
    %25 = vector.load %arg2[%c0_12, %c0_13, %c0_14] : memref<1x8x16xf32, #tpu.memory_space<vmem>>, vector<1x8x16xf32>
    %26 = arith.negf %25 : vector<1x8x16xf32>
    %27 = math.exp %26 : vector<1x8x16xf32>
    %cst_15 = arith.constant 1.000000e+00 : f32
    %28 = vector.broadcast %cst_15 : f32 to vector<1x8x16xf32>
    %29 = arith.addf %28, %27 : vector<1x8x16xf32>
    %30 = arith.divf %28, %29 : vector<1x8x16xf32>
    %31 = vector.broadcast %13 : vector<1x8x1xf32> to vector<1x8x16xf32>
    %32 = arith.mulf %30, %31 : vector<1x8x16xf32>
    %c0_16 = arith.constant 0 : index
    %c0_17 = arith.constant 0 : index
    %c0_18 = arith.constant 0 : index
    %33 = vector.load %arg3[%c0_16, %c0_17, %c0_18] : memref<1x8x2xf32, #tpu.memory_space<vmem>>, vector<1x8x2xf32>
    %34 = vector.extract_strided_slice %33 {offsets = [0, 0, 1], sizes = [1, 8, 1], strides = [1, 1, 1]} : vector<1x8x2xf32> to vector<1x8x1xf32>
    %35 = vector.extract_strided_slice %33 {offsets = [0, 0, 0], sizes = [1, 8, 1], strides = [1, 1, 1]} : vector<1x8x2xf32> to vector<1x8x1xf32>
    %36 = arith.subf %34, %35 : vector<1x8x1xf32>
    %37 = arith.negf %36 : vector<1x8x1xf32>
    %38 = math.exp %37 : vector<1x8x1xf32>
    %cst_19 = arith.constant 1.000000e+00 : f32
    %39 = vector.broadcast %cst_19 : f32 to vector<1x8x1xf32>
    %40 = arith.addf %39, %38 : vector<1x8x1xf32>
    %41 = arith.divf %39, %40 : vector<1x8x1xf32>
    %42 = vector.broadcast %41 : vector<1x8x1xf32> to vector<1x8x16xf32>
    %43 = arith.mulf %32, %42 : vector<1x8x16xf32>
    %c0_20 = arith.constant 0 : index
    %c0_21 = arith.constant 0 : index
    %c0_22 = arith.constant 0 : index
    %44 = vector.load %arg8[%c0_20, %c0_21, %c0_22] : memref<1x8x16xf32, #tpu.memory_space<vmem>>, vector<1x8x16xf32>
    tpu.vector_store %arg8[%c0_20, %c0_21, %c0_22], %43 {strides = array<i32>} : memref<1x8x16xf32, #tpu.memory_space<vmem>>, vector<1x8x16xf32>,
    %c0_23 = arith.constant 0 : index
    %c0_24 = arith.constant 0 : index
    %c0_25 = arith.constant 0 : index
    %45 = vector.load %arg6[%c0_23, %c0_24, %c0_25] : memref<1x1x2xf32, #tpu.memory_space<vmem>>, vector<1x1x2xf32>
    %c0_26 = arith.constant 0 : index
    %c0_27 = arith.constant 0 : index
    %c0_28 = arith.constant 0 : index
    %46 = vector.load %arg4[%c0_26, %c0_27, %c0_28] : memref<1x8x4xf32, #tpu.memory_space<vmem>>, vector<1x8x4xf32>
    %47 = vector.extract_strided_slice %46 {offsets = [0, 0, 0], sizes = [1, 8, 2], strides = [1, 1, 1]} : vector<1x8x4xf32> to vector<1x8x2xf32>
    %48 = vector.extract_strided_slice %46 {offsets = [0, 0, 2], sizes = [1, 8, 2], strides = [1, 1, 1]} : vector<1x8x4xf32> to vector<1x8x2xf32>
    %cst_29 = arith.constant 5.000000e-01 : f32
    %49 = vector.broadcast %cst_29 : f32 to vector<1x8x2xf32>
    %50 = arith.mulf %48, %49 : vector<1x8x2xf32>
    %51 = arith.subf %47, %50 : vector<1x8x2xf32>
    %52 = vector.broadcast %45 : vector<1x1x2xf32> to vector<1x8x2xf32>
    %53 = arith.mulf %51, %52 : vector<1x8x2xf32>
    %c0_30 = arith.constant 0 : index
    %c0_31 = arith.constant 0 : index
    %c0_32 = arith.constant 0 : index
    %54 = vector.load %arg10[%c0_30, %c0_31, %c0_32] : memref<1x16x4xf32, #tpu.memory_space<vmem>>, vector<1x8x2xf32>
    tpu.vector_store %arg10[%c0_30, %c0_31, %c0_32], %53 {strides = array<i32>} : memref<1x16x4xf32, #tpu.memory_space<vmem>>, vector<1x8x2xf32>,
    %55 = arith.addf %47, %50 : vector<1x8x2xf32>
    %56 = vector.broadcast %45 : vector<1x1x2xf32> to vector<1x8x2xf32>
    %57 = arith.mulf %55, %56 : vector<1x8x2xf32>
    %c0_33 = arith.constant 0 : index
    %c0_34 = arith.constant 0 : index
    %c2 = arith.constant 2 : index
    %58 = vector.load %arg10[%c0_33, %c0_34, %c2] : memref<1x16x4xf32, #tpu.memory_space<vmem>>, vector<1x8x2xf32>
    tpu.vector_store %arg10[%c0_33, %c0_34, %c2], %57 {strides = array<i32>} : memref<1x16x4xf32, #tpu.memory_space<vmem>>, vector<1x8x2xf32>,
    %c0_35 = arith.constant 0 : index
    %c0_36 = arith.constant 0 : index
    %c0_37 = arith.constant 0 : index
    %59 = vector.load %arg5[%c0_35, %c0_36, %c0_37] : memref<1x8x4xf32, #tpu.memory_space<vmem>>, vector<1x8x4xf32>
    %60 = vector.extract_strided_slice %59 {offsets = [0, 0, 0], sizes = [1, 8, 2], strides = [1, 1, 1]} : vector<1x8x4xf32> to vector<1x8x2xf32>
    %61 = vector.extract_strided_slice %59 {offsets = [0, 0, 2], sizes = [1, 8, 2], strides = [1, 1, 1]} : vector<1x8x4xf32> to vector<1x8x2xf32>
    %cst_38 = arith.constant 5.000000e-01 : f32
    %62 = vector.broadcast %cst_38 : f32 to vector<1x8x2xf32>
    %63 = arith.mulf %61, %62 : vector<1x8x2xf32>
    %64 = arith.subf %60, %63 : vector<1x8x2xf32>
    %65 = vector.broadcast %45 : vector<1x1x2xf32> to vector<1x8x2xf32>
    %66 = arith.mulf %64, %65 : vector<1x8x2xf32>
    %c0_39 = arith.constant 0 : index
    %c8_40 = arith.constant 8 : index
    %c0_41 = arith.constant 0 : index
    %67 = vector.load %arg10[%c0_39, %c8_40, %c0_41] : memref<1x16x4xf32, #tpu.memory_space<vmem>>, vector<1x8x2xf32>
    tpu.vector_store %arg10[%c0_39, %c8_40, %c0_41], %66 {strides = array<i32>} : memref<1x16x4xf32, #tpu.memory_space<vmem>>, vector<1x8x2xf32>,
    %68 = arith.addf %60, %63 : vector<1x8x2xf32>
    %69 = vector.broadcast %45 : vector<1x1x2xf32> to vector<1x8x2xf32>
    %70 = arith.mulf %68, %69 : vector<1x8x2xf32>
    %c0_42 = arith.constant 0 : index
    %c8_43 = arith.constant 8 : index
    %c2_44 = arith.constant 2 : index
    %71 = vector.load %arg10[%c0_42, %c8_43, %c2_44] : memref<1x16x4xf32, #tpu.memory_space<vmem>>, vector<1x8x2xf32>
    tpu.vector_store %arg10[%c0_42, %c8_43, %c2_44], %70 {strides = array<i32>} : memref<1x16x4xf32, #tpu.memory_space<vmem>>, vector<1x8x2xf32>,
    return
  }
  func.func @transform_0(%arg0: i32) -> (i32, i32, i32) {
    %c0_i32 = arith.constant 0 : i32
    %c0_i32_0 = arith.constant 0 : i32
    %c0_i32_1 = arith.constant 0 : i32
    return %arg0, %c0_i32, %c0_i32_0 : i32, i32, i32
  }
  func.func @transform_1(%arg0: i32) -> (i32, i32, i32) {
    %c0_i32 = arith.constant 0 : i32
    %c0_i32_0 = arith.constant 0 : i32
    %c0_i32_1 = arith.constant 0 : i32
    return %arg0, %c0_i32, %c0_i32_0 : i32, i32, i32
  }
  func.func @transform_2(%arg0: i32) -> (i32, i32, i32) {
    %c0_i32 = arith.constant 0 : i32
    %c0_i32_0 = arith.constant 0 : i32
    %c0_i32_1 = arith.constant 0 : i32
    return %arg0, %c0_i32, %c0_i32_0 : i32, i32, i32
  }
  func.func @transform_3(%arg0: i32) -> (i32, i32, i32) {
    %c0_i32 = arith.constant 0 : i32
    %c0_i32_0 = arith.constant 0 : i32
    %c0_i32_1 = arith.constant 0 : i32
    return %arg0, %c0_i32, %c0_i32_0 : i32, i32, i32
  }
  func.func @transform_4(%arg0: i32) -> (i32, i32, i32) {
    %c0_i32 = arith.constant 0 : i32
    %c0_i32_0 = arith.constant 0 : i32
    %c0_i32_1 = arith.constant 0 : i32
    return %arg0, %c0_i32, %c0_i32_0 : i32, i32, i32
  }
  func.func @transform_5(%arg0: i32) -> (i32, i32, i32) {
    %c0_i32 = arith.constant 0 : i32
    %c0_i32_0 = arith.constant 0 : i32
    %c0_i32_1 = arith.constant 0 : i32
    return %arg0, %c0_i32, %c0_i32_0 : i32, i32, i32
  }
  func.func @transform_6(%arg0: i32) -> (i32, i32, i32) {
    %c0_i32 = arith.constant 0 : i32
    %c0_i32_0 = arith.constant 0 : i32
    %c0_i32_1 = arith.constant 0 : i32
    return %arg0, %c0_i32, %c0_i32_0 : i32, i32, i32
  }
  func.func @transform_7(%arg0: i32) -> (i32, i32, i32) {
    %c0_i32 = arith.constant 0 : i32
    %c0_i32_0 = arith.constant 0 : i32
    %c0_i32_1 = arith.constant 0 : i32
    return %arg0, %c0_i32, %c0_i32_0 : i32, i32, i32
  }
  func.func @transform_8(%arg0: i32) -> (i32, i32, i32) {
    %c0_i32 = arith.constant 0 : i32
    %c0_i32_0 = arith.constant 0 : i32
    %c0_i32_1 = arith.constant 0 : i32
    return %arg0, %c0_i32, %c0_i32_0 : i32, i32, i32
  }
  func.func @transform_9(%arg0: i32) -> (i32, i32, i32) {
    %c0_i32 = arith.constant 0 : i32
    %c0_i32_0 = arith.constant 0 : i32
    %c0_i32_1 = arith.constant 0 : i32
    return %arg0, %c0_i32, %c0_i32_0 : i32, i32, i32
  }
}

</mosaic_0001>

<bundles_post_ra>
// kernel: tpu_custom_call.1
= control target key start
LH: loop header
LB: loop body
LE: loop exit
PB: predicated region body
PF: predicated region fallthrough
CT: control target
= control target key end

     0   :  { %s1159_s0 = inlined_call_operand.vmem [shape: f32[2,8,12], index: 0, kind: input, shape index: {}]   ;;  %s1160_s1 = inlined_call_operand.vmem [shape: f32[2,8,16], index: 1, kind: input, shape index: {}]   ;;  %s1161_s2 = inlined_call_operand.vmem [shape: f32[2,8,2], index: 2, kind: input, shape index: {}]   ;;  %s1162_s3 = inlined_call_operand.vmem [shape: f32[2,8,4], index: 3, kind: input, shape index: {}]   ;;  %s1163_s4 = inlined_call_operand.vmem [shape: f32[2,8,4], index: 4, kind: input, shape index: {}]   ;;  %s1164_s5 = inlined_call_operand.vmem [shape: f32[2,1,2], index: 5, kind: input, shape index: {}]   ;;  %s1165_s6 = inlined_call_operand.vmem [shape: f32[2,8,1], index: 6, kind: output, shape index: {0}]   ;;  %s1166_s7 = inlined_call_operand.hbm [shape: f32[2,8,16], index: 7, kind: output, shape index: {1}]   ;;  %s1167_s8 = inlined_call_operand.vmem [shape: s32[2,16,1], index: 8, kind: output, shape index: {2}]   ;;  %s1168_s9 = inlined_call_operand.vmem [shape: f32[2,16,4], index: 9, kind: output, shape index: {3}]  }
   0x1   :  { %1169 = sst [smem:[#allocation5_spill]] %s1159_s0 }
   0x2   :  { %15 = vsyncpa [#allocation3], 0 }
   0x3   :  { %17 = vsyncpa [#allocation3 + $0x1], 0  ;;  %s1003_s30 = smov 0   ;;  %s1005_s10 = smov 0  }
   0x4   :  { %s1007_s11 = smov 0   ;;  %s1009_s12 = smov 0  }
   0x5 LB: > { %s1024_s13 = sadd.s32 4294967295, %s943_s12   ;;  %s795_s14 = sadd.s32 4294967294, %s943_s12   ;;  %s943_s12 = sphi %s1009_s12, %s1176_s12   ;;  %s939_s11 = sphi %s1007_s11, %s1175_s11   ;;  %s935_s10 = sphi %s1005_s10, %s1174_s10   ;;  %s931_s30 = sphi %s1003_s30, %s1173_s30  }
   0x6   : > { %s1028_s15 = sadd.s32 1, %s943_s12   ;;  %s212_s16 = sadd.s32 1, %s939_s11 }
   0x7   : > { %s209_s17 = ssub.s32 %s943_s12, %s1028_s15  ;;  %p222_p0 = scmp.ne.s32.totalorder %s939_s11, %s935_s10 }
   0x8   : > { %p210_p1 = scmp.eq.s32.totalorder %s209_s17, 0  ;;  %p223_p2 = scmp.eq.s32.totalorder %s1024_s13, 1 }
   0x9   : > { %p228_p3 = scmp.ne.s32.totalorder %s935_s10, %s931_s30  ;;  %p229_p4 = scmp.eq.s32.totalorder %s795_s14, 1 }
   0xa   : > { %s1039_s18 = scalar_select %p210_p1, %s939_s11, %s212_s16  }
   0xb   : > { %p1041_p5 = por %p223_p2, %p222_p0  ;;  %p1045_p6 = por %p229_p4, %p228_p3 }
   0xc   : > { %p798_p7 = scmp.ge.s32.totalorder %s943_s12, 1  ;;  %p340_p8 = scmp.lt.s32.totalorder %s943_s12, 3 }
   0xe   : > { %p341_p9 = pnand %p798_p7, %p340_p8 }
   0xf   : > { %p408_p10 = scmp.lt.s32.totalorder (!%p341_p9), %s1024_s13, 1  ;;  %s1172_s0 = sld [smem:[#allocation5_spill]] (!%p341_p9) }
  0x10   : > { %344 = sbr.rel (%p341_p9) target bundleno = 611 (0x263), region = 44  ;;  %s945_s29 = smov (!%p341_p9), 1  }
  0x11   : > { %s947_s23 = smov (!%p341_p9), 126   ;;  %s951_s27 = smov (!%p341_p9), 117  }
  0x12   : > { %s391_s16 = sand.u32 (!%p341_p9), 1, %s935_s10  }
  0x15   : > { %s1053_s21 = scalar_select %p408_p10, %s1024_s13, 1  ;;  %vm446_vm0 = vcmask 89088   ;;  %v946_v3 = vmov 11   ;;  %v474_v4 = vlaneseq  ;;  %v948_v14 = vmov 1  }
  0x16   : > { %865 = vset.pattern.permute.xlu0 %v946_v3  ;;  %866 = vset.pattern.permute.xlu1 %v948_v14  ;;  %vm459_vm2 = vcmask 97280   ;;  %vm542_vm4 = vcmask 15360   ;;  %vm472_vm5 = vcmask 7168   ;;  %v949_v52 = vmov 0  }
  0x17   : > { %s1056_s22 = sshll.u32 %s1053_s21, 3  ;;  %v475_v5 = vand.u32 127, %v474_v4  ;;  %s817_s14 = sshll.u32 %s1053_s21, 4  ;;  %vm550_vm6 = vcmask 31760   ;;  %vm525_vm7 = vcmask 130048  }
  0x18   : > { %s411_s25 = scalar_lea.vmem %s1172_s0, %s1056_s22  ;;  %s419_s28 = scalar_lea.vmem %s1161_s2, %s1056_s22 }
  0x19   : > { %v445_v0 = vld [vmem:[%s411_s25] sm:$0xff]  ;;  %s427_s17 = scalar_lea.vmem %s1163_s4, %s1056_s22  ;;  %s423_s26 = scalar_lea.vmem %s1162_s3, %s1056_s22 }
  0x1a   : > { %v507_v1 = vld [vmem:[%s419_s28] sm:$0xff]  ;;  %v447_v2 = vsel %vm446_vm0, %v445_v0, -inf  ;;  %s1088_s24 = scalar_lea.vmem %s1168_s9, %s817_s14  ;;  %s439_s25 = scalar_lea.vmem %s1167_s8, %s817_s14 }
  0x1b   : > { %509 = vrot.lane.b32.xlu1 %v507_v1, %s945_s29  ;;  %448 = vmax.xlane.f32.xlu0 %v447_v2  ;;  %v1071_v7 = vld [vmem:[%s427_s17] sm:$0xff]  ;;  %s430_s29 = scalar_lea.vmem %s1164_s5, %s1053_s21  ;;  %493 = vst.msk [vmem:[%s439_s25] sm:$0xff] %vm472_vm5, %v949_v52  ;;  %s415_s14 = scalar_lea.vmem %s1160_s1, %s1056_s22 }
  0x1c   : > { %v553_v11 = vmul.f32 0.5, %v1071_v7  ;;  %v528_v29 = vld [vmem:[%s423_s26] sm:$0xff]  ;;  %s950_s26 = smov 2   ;;  %s799_s17 = sshll.u32 %s391_s16, 3 }
  0x1d   : > { %v529_v30 = vmul.f32 0.5, %v528_v29  ;;  %v812_v34 = vld [vmem:[%s430_s29] ss:$0 sm:$0xff]  ;;  %s814_s21 = sshll.u32 %s1024_s13, 7 }
  0x1e   : > { %v495_v55 = vld [vmem:[%s415_s14] sm:$0xff]  ;;  %s1109_s28 = scalar_lea.hbm %s1166_s7, %s814_s21  ;;  %s434_s14 = scalar_lea.vmem %s1165_s6, %s1056_s22 }
  0x1f   : > { %v810_v56 = vmul.f32 -1.442695, %v495_v55  ;;  %s952_s21 = smov [#allocation2]  }
  0x8d   : > { %v510_v15 = vpop.permute.xlu1 %509 }
  0x8e   : > { %v512_v16 = vsub.f32 %v507_v1, %v510_v15 }
  0x90   : > { %v811_v18 = vmul.f32 -1.442695, %v512_v16 }
  0x92   : > { %869 = vpow2.f32 %v811_v18 }
  0x9f   : > { %v870_v22 = vpop.eup %869 }
  0xa0   : > { %v516_v27 = vadd.f32 1.0, %v870_v22 }
  0xa4   : > { %v449_v6 = vpop.xlane.xlu0 %448 }
  0xa5   : > { %v450_v8 = vmax.f32 %v449_v6, %v445_v0  ;;  %vm476_vm1 = vcmp.eq.f32.partialorder %v445_v0, %v449_v6 }
  0xa6   : > { %v477_v9 = vsel %vm476_vm1, %v475_v5, 12 }
  0xa7   : > { %453 = vperm.xlu0 %865, %v450_v8   ;;  %v478_v10 = vsel %vm446_vm0, %v477_v9, 2147483647  ;;  %v463_v36 = vsub.f32 %v449_v6, %v450_v8 }
  0xa8   : > { %v480_v12 = vshra.s32 %v478_v10, 16  ;;  %v479_v21 = vand.u32 65535, %v478_v10 }
  0xa9   : > { %v464_v37 = vmul.f32 1.442695, %v463_v36 }
  0xaa   : > { %v482_v13 = vcvt.s32.f32 %v480_v12  ;;  %v481_v26 = vcvt.s32.f32 %v479_v21 }
  0xab   : > { %555 = vrot.lane.b32.xlu0 %v553_v11, %s947_s23 }
  0xac   : > { %483 = vmin.xlane.f32.xlu1 %v482_v13  ;;  %868 = vset.pattern.permute.xlu0 %v948_v14 }
 0x122   : > { %v454_v17 = vpop.permute.xlu0 %453 }
 0x123   : > { %v456_v19 = vsub.f32 %v445_v0, %v454_v17 }
 0x125   : > { %v457_v20 = vmul.f32 1.442695, %v456_v19 }
 0x126   : > { %v556_v32 = vpop.permute.xlu0 %555 }
 0x127   : > { %871 = vpow2.f32 %v457_v20  ;;  %v558_v33 = vsub.f32 %v1071_v7, %v556_v32  ;;  %v561_v53 = vadd.f32 %v556_v32, %v1071_v7 }
 0x128   : > { %873 = vrcp.f32 %v516_v27 }
 0x129   : > { %v559_v35 = vmul.f32 %v812_v34, %v558_v33  ;;  %875 = vpow2.f32 %v464_v37  ;;  %v562_v54 = vmul.f32 %v812_v34, %v561_v53 }
 0x12b   : > { %560 = vst.msk [vmem:[%s1088_s24 + $0x8] sm:$0xff] %vm542_vm4, %v559_v35 }
 0x134   : > { %v872_v23 = vpop.eup %871 }
 0x135   : > { %v484_v24 = vpop.xlane.xlu1 %483  ;;  %v460_v25 = vsel %vm459_vm2, %v872_v23, 0.0  ;;  %v874_v31 = vpop.eup %873 }
 0x136   : > { %461 = vadd.xlane.f32.xlu1 %v460_v25  ;;  %vm485_vm3 = vcmp.eq.f32.partialorder %v482_v13, %v484_v24  ;;  %v490_v38 = vcvt.f32.s32 %v484_v24  ;;  %v876_v47 = vpop.eup %875 }
 0x137   : > { %v486_v28 = vsel %vm485_vm3, %v481_v26, inf }
 0x138   : > { %487 = vmin.xlane.f32.xlu0 %v486_v28  ;;  %v491_v41 = vshll.u32 %v490_v38, 16 }
 0x147   : > { %531 = vrot.lane.b32.xlu1 %v529_v30, %s947_s23  ;;  %s393_s23 = scalar_lea.vmem [#allocation2], %s799_s17  ;;  %s573_s17 = scalar_lea.sflag [#allocation3], %s391_s16 }
 0x14b   : > { %521 = vperm.xlu1 %866, %v874_v31  }
 0x14f   : > { %867 = vset.pattern.permute.xlu1 %v946_v3 }
 0x1bf   : > { %v462_v39 = vpop.xlane.xlu1 %461 }
 0x1c0   : > { %877 = vrcp.f32 %v462_v39 }
 0x1c1   : > { %v488_v40 = vpop.xlane.xlu0 %487  ;;  %879 = vpow2.f32 %v810_v56 }
 0x1c2   : > { %v489_v42 = vcvt.f32.s32 %v488_v40 }
 0x1c3   : > { %v532_v43 = vpop.permute.xlu1 %531 }
 0x1c4   : > { %v492_v44 = vadd.s32 %v491_v41, %v489_v42  ;;  %v534_v45 = vsub.f32 %v528_v29, %v532_v43  ;;  %v544_v48 = vadd.f32 %v532_v43, %v528_v29 }
 0x1c6   : > { %v541_v46 = vmul.f32 %v812_v34, %v534_v45  ;;  %494 = vst.msk [vmem:[%s439_s25 + $0x8] sm:$0xff] %vm472_vm5, %v492_v44  ;;  %v545_v51 = vmul.f32 %v812_v34, %v544_v48  ;;  %s599_s25 = sshll.u32 %s393_s23, 4  ;;  %s1111_s25 = int_to_ptr.vmem [resolvable:$true] %s599_s25 }
 0x1c7   : > { %v522_v59 = vpop.permute.xlu1 %521  ;;  %s883_s0 = scalar_lea.vmem %s1111_s25, 128 }
 0x1c8   : > { %543 = vst.msk [vmem:[%s1088_s24] sm:$0xff] %vm542_vm4, %v541_v46  ;;  %p884_p11 = scmp.ne.s32.totalorder %s1111_s25, %s883_s0 }
 0x1ca   : > { %p885_p12 = pnand %p884_p11, %p1041_p5 }
 0x1cc   : > { %p886_p13 = pneg %p885_p12 }
 0x1cd   : > { %v878_v49 = vpop.eup %877 }
 0x1ce   : > { %v467_v50 = vmul.f32 %v878_v49, %v876_v47  ;;  %v880_v57 = vpop.eup %879 }
 0x1cf   : > { %v499_v58 = vadd.f32 1.0, %v880_v57 }
 0x1d0   : > { %503 = vperm.xlu1 %867, %v467_v50  }
 0x1d1   : > { %881 = vrcp.f32 %v499_v58 }
 0x1d4   : > { %547 = vrot.lane.b32.xlu1 %v545_v51, %s950_s26 }
 0x1d8   : > { %469 = vrot.lane.b32.xlu1 %v467_v50, %s951_s27 }
 0x1dc   : > { %564 = vrot.lane.b32.xlu1 %v562_v54, %s950_s26  ;;  %s887_s26 = sshll.u32 %s952_s21, 4  ;;  %s888_s26 = int_to_ptr.vmem [resolvable:$false] %s887_s26 }
 0x1dd   : > { %s889_s27 = scalar_lea.vmem %s888_s26, 256  ;;  %p890_p0 = scmp.lt.s32.totalorder %s1111_s25, %s888_s26 }
 0x1de   : > { %v882_v60 = vpop.eup %881  ;;  %p891_p1 = scmp.lt.s32.totalorder %s889_s27, %s883_s0 }
 0x1e0   : > { %p892_p2 = por %p891_p1, %p890_p0 }
 0x1e2   : > { %p893_p3 = pnand %p892_p2, %p886_p13 }
 0x24b   : > { %v504_v61 = vpop.permute.xlu1 %503 }
 0x24c   : > { %v506_v62 = vmul.f32 %v882_v60, %v504_v61 }
 0x24e   : > { %v524_v63 = vmul.f32 %v522_v59, %v506_v62 }
 0x24f   : > { %v548_v0 = vpop.permute.xlu1 %547 }
 0x250   : > { %551 = vst.msk [vmem:[%s1088_s24] sm:$0xff] %vm550_vm6, %v548_v0 }
 0x251   : > { %526 = vst.msk [vmem:[%s393_s23] sm:$0xff] %vm525_vm7, %v524_v63 }
 0x252   : > { %896 = shalt.err (!%p893_p3)
}
 0x253   : > { %s897_s22 = scalar_lea.hbm %s1109_s28, 128  ;;  %s901_s13 = scalar_lea.hbm %s1166_s7, 256 }
 0x254   : > { %p898_p4 = scmp.ne.s32.totalorder %s1109_s28, %s897_s22  ;;  %p902_p9 = scmp.lt.s32.totalorder %s1109_s28, %s1166_s7 }
 0x255   : > { %p903_p10 = scmp.lt.s32.totalorder %s901_s13, %s897_s22 }
 0x256   : > { %p899_p7 = pnand %p898_p4, %p1041_p5 }
 0x257   : > { %p904_p11 = por %p903_p10, %p902_p9 }
 0x258   : > { %p900_p8 = pneg %p899_p7 }
 0x25a   : > { %p905_p12 = pnand %p904_p11, %p900_p8 }
 0x25c   : > { %908 = shalt.err (!%p905_p12)
}
 0x25d   : > { %819 = dma.vmem_to_hbm [thread:$0]  (%p1041_p5), %s1111_s25, 128, %s1109_s28, %s573_s17   ;;  %v470_v1 = vpop.permute.xlu1 %469 }
 0x25e   : > { %473 = vst.msk [vmem:[%s434_s14] sm:$0xff] %vm472_vm5, %v470_v1 }
 0x261   : > { %v565_v2 = vpop.permute.xlu1 %564 }
 0x262   : > { %567 = vst.msk [vmem:[%s1088_s24 + $0x8] sm:$0xff] %vm550_vm6, %v565_v2 }
 0x263 PF: > { %p825_p13 = scmp.ge.s32.totalorder %s943_s12, 2  ;;  %s624_s0 = sand.u32 1, %s931_s30  }
 0x264   : > { %s625_s19 = scalar_lea.sflag [#allocation3], %s624_s0 }
 0x265   : > { %p822_p0 = pnand %p825_p13, %p1045_p6 }
 0x267   : > { %p823_p1 = pneg %p822_p0 }
 0x269   : > { %926 = dma.done.wait (%p823_p1), %s625_s19, 128  }
 0x26a   : > { %928 = vsyncadd (%p823_p1), %s625_s19, 4294967168  ;;  %p20_p5 = scmp.ge.s32.totalorder %s1028_s15, 4   ;;  %s1173_s30 = smov %s935_s10 }
 0x26b   : > { %s1174_s10 = smov %s939_s11  ;;  %s1175_s11 = smov %s1039_s18 }
 0x26c   : > { %s1176_s12 = smov %s1028_s15  ;;  %22 = sbr.rel (!%p20_p5) target bundleno = 5 (0x5), region = 130 }
 0x271   :  { %646 = vsyncpa [#allocation3], 1 }
 0x272   :  { %648 = vsyncpa [#allocation3 + $0x1], 1 }

</bundles_post_ra>
